<compile_context>
chip_gen: v7x
topology: tpu7x:2x2x1
jax: 0.10.0
libtpu: 0.0.40
codegen_flags: <defaults>
</compile_context>

<pallas_src>
import functools

import jax
import jax.numpy as jnp
import numpy as np
from jax import lax
from jax.experimental import pallas as pl
from jax.experimental.pallas import tpu as pltpu

EPS = 1e-5
NEG_SLOPE = 0.05

# Fixed enumeration order of the 3x3 taps: (dy, dx), row-major.
_OFFSETS = [(dy, dx) for dy in (-1, 0, 1) for dx in (-1, 0, 1)]


def _instance_norm(y, gamma, beta):
    # y: (C, HW) f32; gamma/beta: (C, 1) f32. One-pass biased stats over HW.
    inv_hw = 1.0 / y.shape[1]
    s = jnp.sum(y, axis=1, keepdims=True)
    ss = jnp.sum(y * y, axis=1, keepdims=True)
    mu = s * inv_hw
    var = ss * inv_hw - mu * mu
    scale = lax.rsqrt(var + EPS) * gamma          # EUP rsqrt, (C,1)
    return (y - mu) * scale + beta


def _conv3x3_lanes(x, w2d, masks, im2col_ref, *, H, W):
    """3x3 SAME conv on a lane-flattened (C, H*W) image.

    x          : (Cin, H*W) f32
    w2d        : (Cout, 9*Cin) f32, column k = ((dy+1)*3 + (dx+1))*Cin + ci
    masks      : (8, H*W) f32, one combined validity mask per off-center offset
                 (same enumeration order as _OFFSETS with (0,0) skipped)
    im2col_ref : VMEM scratch (9*Cin, H*W) f32
    """
    HW = H * W
    Cin = x.shape[0]
    m = 0
    for t, (dy, dx) in enumerate(_OFFSETS):
        off = dy * W + dx
        shift = (-off) % HW                 # rolled[p] = x[p + off]  (mod HW)
        rolled = pltpu.roll(x, shift, axis=1) if shift else x
        if (dy, dx) != (0, 0):
            # zero out positions whose (y+dy, x+dx) falls outside the image
            rolled = rolled * masks[m:m + 1, :]
            m += 1
        im2col_ref[t * Cin:(t + 1) * Cin, :] = rolled
    # single matmul: (Cout, 9*Cin) @ (9*Cin, HW) -> lane-dense (Cout, HW)
    return jnp.dot(w2d, im2col_ref[...], preferred_element_type=jnp.float32)


def _residual_block_kernel(x_ref, w1_ref, w2_ref, g1_ref, b1_ref,
                           g2_ref, b2_ref, m_ref, o_ref, im2col_ref, *, H, W):
    # x_ref/o_ref: (1, C, H*W); weights: (C, 9*C); gammas/betas: (C, 1)
    x = x_ref[0]               # (C, HW) f32
    masks = m_ref[...]         # (8, HW) f32

    h = _conv3x3_lanes(x, w1_ref[...], masks, im2col_ref, H=H, W=W)
    h = _instance_norm(h, g1_ref[...], b1_ref[...])
    h = jnp.where(h >= 0.0, h, NEG_SLOPE * h)          # LeakyReLU(0.05)

    h = _conv3x3_lanes(h, w2_ref[...], masks, im2col_ref, H=H, W=W)
    h = _instance_norm(h, g2_ref[...], b2_ref[...])

    o_ref[0] = x + h                                    # residual add


def residual_block_pallas(x_nchw, w1_hwio, w2_hwio, g1, b1, g2, b2):
    """x_nchw: (N, C, H, W) f32. Conv weights stored HWIO (3,3,Cin,Cout)."""
    N, C, H, W = x_nchw.shape
    Cout = w1_hwio.shape[-1]
    assert w1_hwio.shape[2] == C and Cout == C, "residual needs dim_in == dim_out"
    HW = H * W

    # NCHW-native: just a (free) reshape, no transpose, no pad.
    x_flat = x_nchw.reshape(N, C, HW).astype(jnp.float32)

    # weights -> (Cout, 9*Cin), column index k = ((dy+1)*3 + (dx+1))*Cin + ci
    w1_2d = jnp.transpose(w1_hwio, (3, 0, 1, 2)).reshape(Cout, 9 * C).astype(jnp.float32)
    w2_2d = jnp.transpose(w2_hwio, (3, 0, 1, 2)).reshape(Cout, 9 * Cout).astype(jnp.float32)

    g1c = g1.reshape(C, 1).astype(jnp.float32)
    b1c = b1.reshape(C, 1).astype(jnp.float32)
    g2c = g2.reshape(C, 1).astype(jnp.float32)
    b2c = b2.reshape(C, 1).astype(jnp.float32)

    # Per-offset combined border-validity masks (constant), one row per
    # off-center tap -> a single VPU multiply per shifted view in the kernel.
    col = np.arange(HW) % W
    row = np.arange(HW) // W
    mask_rows = []
    for dy, dx in _OFFSETS:
        if (dy, dx) == (0, 0):
            continue
        valid = ((row + dy >= 0) & (row + dy <= H - 1) &
                 (col + dx >= 0) & (col + dx <= W - 1))
        mask_rows.append(valid)
    masks = jnp.asarray(np.stack(mask_rows).astype(np.float32))   # (8, HW)

    kernel = functools.partial(_residual_block_kernel, H=H, W=W)

    out_flat = pl.pallas_call(
        kernel,
        out_shape=jax.ShapeDtypeStruct((N, C, HW), jnp.float32),
        grid_spec=pltpu.PrefetchScalarGridSpec(
            num_scalar_prefetch=0,
            grid=(N,),
            in_specs=[
                pl.BlockSpec((1, C, HW), lambda n: (n, 0, 0)),        # x
                pl.BlockSpec((Cout, 9 * C), lambda n: (0, 0)),        # w1
                pl.BlockSpec((Cout, 9 * Cout), lambda n: (0, 0)),     # w2
                pl.BlockSpec((C, 1), lambda n: (0, 0)),               # g1
                pl.BlockSpec((C, 1), lambda n: (0, 0)),               # b1
                pl.BlockSpec((C, 1), lambda n: (0, 0)),               # g2
                pl.BlockSpec((C, 1), lambda n: (0, 0)),               # b2
                pl.BlockSpec((8, HW), lambda n: (0, 0)),              # masks
            ],
            out_specs=pl.BlockSpec((1, C, HW), lambda n: (n, 0, 0)),
            scratch_shapes=[pltpu.VMEM((9 * C, HW), jnp.float32)],    # im2col
        ),
        compiler_params=pltpu.CompilerParams(
            dimension_semantics=("parallel",)),
    )(x_flat, w1_2d, w2_2d, g1c, b1c, g2c, b2c, masks)

    return out_flat.reshape(N, C, H, W)


# -------- pure-JAX reference (for correctness check) --------
def _instance_norm_ref(x_nchw, gamma, beta):
    mu = jnp.mean(x_nchw, axis=(2, 3), keepdims=True)
    var = jnp.mean((x_nchw - mu) ** 2, axis=(2, 3), keepdims=True)
    y = (x_nchw - mu) / jnp.sqrt(var + EPS)
    return y * gamma[None, :, None, None] + beta[None, :, None, None]


def residual_block_ref(x_nchw, w1_hwio, w2_hwio, g1, b1, g2, b2):
    w1_oihw = jnp.transpose(w1_hwio, (3, 2, 0, 1))
    w2_oihw = jnp.transpose(w2_hwio, (3, 2, 0, 1))
    dn = ("NCHW", "OIHW", "NCHW")
    h = lax.conv_general_dilated(x_nchw, w1_oihw, (1, 1), "SAME",
                                 dimension_numbers=dn)
    h = _instance_norm_ref(h, g1, b1)
    h = jnp.where(h >= 0.0, h, NEG_SLOPE * h)
    h = lax.conv_general_dilated(h, w2_oihw, (1, 1), "SAME",
                                 dimension_numbers=dn)
    h = _instance_norm_ref(h, g2, b2)
    return x_nchw + h


if __name__ == "__main__":
    key = jax.random.PRNGKey(0)
    N, C, H, W = 2, 4, 16, 16          # dim_in = dim_out = 4
    k_x, k_w1, k_w2, k_g1, k_b1, k_g2, k_b2 = jax.random.split(key, 7)

    x = jax.random.normal(k_x, (N, C, H, W), dtype=jnp.float32)
    # Conv2d weights (no bias); stored HWIO (3,3,Cin,Cout) in this script.
    w1 = 0.1 * jax.random.normal(k_w1, (3, 3, C, C), dtype=jnp.float32)
    w2 = 0.1 * jax.random.normal(k_w2, (3, 3, C, C), dtype=jnp.float32)
    # InstanceNorm affine params, perturbed so the affine path is exercised.
    g1 = 1.0 + 0.1 * jax.random.normal(k_g1, (C,), dtype=jnp.float32)
    b1 = 0.1 * jax.random.normal(k_b1, (C,), dtype=jnp.float32)
    g2 = 1.0 + 0.1 * jax.random.normal(k_g2, (C,), dtype=jnp.float32)
    b2 = 0.1 * jax.random.normal(k_b2, (C,), dtype=jnp.float32)

    out = residual_block_pallas(x, w1, w2, g1, b1, g2, b2)
    out = jax.block_until_ready(out)

    ref = residual_block_ref(x, w1, w2, g1, b1, g2, b2)
    ref = jax.block_until_ready(ref)

    assert out.shape == (N, C, H, W)
    if not jnp.allclose(out, ref, rtol=1e-3, atol=1e-3):
        raise AssertionError("Pallas kernel mismatch vs JAX reference")

    print("KERNEL_OK")
</pallas_src>

<mosaic_0001>
module attributes {stable_mosaic.version = 11 : i64} {
  func.func @_residual_block_kernel(%arg0: i32, %arg1: memref<1x4x256xf32, #tpu.memory_space<vmem>>, %arg2: memref<4x36xf32, #tpu.memory_space<vmem>>, %arg3: memref<4x36xf32, #tpu.memory_space<vmem>>, %arg4: memref<4x1xf32, #tpu.memory_space<vmem>>, %arg5: memref<4x1xf32, #tpu.memory_space<vmem>>, %arg6: memref<4x1xf32, #tpu.memory_space<vmem>>, %arg7: memref<4x1xf32, #tpu.memory_space<vmem>>, %arg8: memref<8x256xf32, #tpu.memory_space<vmem>>, %arg9: memref<1x4x256xf32, #tpu.memory_space<vmem>>, %arg10: memref<36x256xf32, #tpu.memory_space<vmem>>) attributes {dimension_semantics = [#tpu.dimension_semantics<parallel>], iteration_bounds = array<i64: 2>, scalar_prefetch = 0 : i64, scratch_operands = 1 : i64, tpu.core_type = #tpu.core_type<tc>, window_params = [{transform_indices = @transform_0, window_bounds = array<i64: 1, 4, 256>}, {pipeline_mode = #tpu.pipeline_mode<synchronous>, transform_indices = @transform_1, window_bounds = array<i64: 4, 36>}, {pipeline_mode = #tpu.pipeline_mode<synchronous>, transform_indices = @transform_2, window_bounds = array<i64: 4, 36>}, {pipeline_mode = #tpu.pipeline_mode<synchronous>, transform_indices = @transform_3, window_bounds = array<i64: 4, 1>}, {pipeline_mode = #tpu.pipeline_mode<synchronous>, transform_indices = @transform_4, window_bounds = array<i64: 4, 1>}, {pipeline_mode = #tpu.pipeline_mode<synchronous>, transform_indices = @transform_5, window_bounds = array<i64: 4, 1>}, {pipeline_mode = #tpu.pipeline_mode<synchronous>, transform_indices = @transform_6, window_bounds = array<i64: 4, 1>}, {pipeline_mode = #tpu.pipeline_mode<synchronous>, transform_indices = @transform_7, window_bounds = array<i64: 8, 256>}, {transform_indices = @transform_8, window_bounds = array<i64: 1, 4, 256>}]} {
    %c0 = arith.constant 0 : index
    %c0_0 = arith.constant 0 : index
    %c0_1 = arith.constant 0 : index
    %0 = vector.load %arg1[%c0, %c0_0, %c0_1] : memref<1x4x256xf32, #tpu.memory_space<vmem>>, vector<1x4x256xf32>
    %1 = vector.shape_cast %0 : vector<1x4x256xf32> to vector<4x256xf32>
    %c0_2 = arith.constant 0 : index
    %c0_3 = arith.constant 0 : index
    %2 = vector.load %arg8[%c0_2, %c0_3] : memref<8x256xf32, #tpu.memory_space<vmem>>, vector<8x256xf32>
    %c0_4 = arith.constant 0 : index
    %c0_5 = arith.constant 0 : index
    %3 = vector.load %arg2[%c0_4, %c0_5] : memref<4x36xf32, #tpu.memory_space<vmem>>, vector<4x36xf32>
    %c17_i32 = arith.constant 17 : i32
    %4 = tpu.dynamic_rotate %1 by %c17_i32 dim 1 : vector<4x256xf32>, i32 -> vector<4x256xf32>
    %5 = vector.extract_strided_slice %2 {offsets = [0, 0], sizes = [1, 256], strides = [1, 1]} : vector<8x256xf32> to vector<1x256xf32>
    %6 = vector.broadcast %5 : vector<1x256xf32> to vector<4x256xf32>
    %7 = arith.mulf %4, %6 : vector<4x256xf32>
    %c0_6 = arith.constant 0 : index
    %c0_7 = arith.constant 0 : index
    %8 = vector.load %arg10[%c0_6, %c0_7] : memref<36x256xf32, #tpu.memory_space<vmem>>, vector<4x256xf32>
    tpu.vector_store %arg10[%c0_6, %c0_7], %7 {strides = array<i32>} : memref<36x256xf32, #tpu.memory_space<vmem>>, vector<4x256xf32>,
    %c16_i32 = arith.constant 16 : i32
    %9 = tpu.dynamic_rotate %1 by %c16_i32 dim 1 : vector<4x256xf32>, i32 -> vector<4x256xf32>
    %10 = vector.extract_strided_slice %2 {offsets = [1, 0], sizes = [1, 256], strides = [1, 1]} : vector<8x256xf32> to vector<1x256xf32>
    %11 = vector.broadcast %10 : vector<1x256xf32> to vector<4x256xf32>
    %12 = arith.mulf %9, %11 : vector<4x256xf32>
    %c4 = arith.constant 4 : index
    %c0_8 = arith.constant 0 : index
    %13 = vector.load %arg10[%c4, %c0_8] : memref<36x256xf32, #tpu.memory_space<vmem>>, vector<4x256xf32>
    tpu.vector_store %arg10[%c4, %c0_8], %12 {strides = array<i32>} : memref<36x256xf32, #tpu.memory_space<vmem>>, vector<4x256xf32>,
    %c15_i32 = arith.constant 15 : i32
    %14 = tpu.dynamic_rotate %1 by %c15_i32 dim 1 : vector<4x256xf32>, i32 -> vector<4x256xf32>
    %15 = vector.extract_strided_slice %2 {offsets = [2, 0], sizes = [1, 256], strides = [1, 1]} : vector<8x256xf32> to vector<1x256xf32>
    %16 = vector.broadcast %15 : vector<1x256xf32> to vector<4x256xf32>
    %17 = arith.mulf %14, %16 : vector<4x256xf32>
    %c8 = arith.constant 8 : index
    %c0_9 = arith.constant 0 : index
    %18 = vector.load %arg10[%c8, %c0_9] : memref<36x256xf32, #tpu.memory_space<vmem>>, vector<4x256xf32>
    tpu.vector_store %arg10[%c8, %c0_9], %17 {strides = array<i32>} : memref<36x256xf32, #tpu.memory_space<vmem>>, vector<4x256xf32>,
    %c1_i32 = arith.constant 1 : i32
    %19 = tpu.dynamic_rotate %1 by %c1_i32 dim 1 : vector<4x256xf32>, i32 -> vector<4x256xf32>
    %20 = vector.extract_strided_slice %2 {offsets = [3, 0], sizes = [1, 256], strides = [1, 1]} : vector<8x256xf32> to vector<1x256xf32>
    %21 = vector.broadcast %20 : vector<1x256xf32> to vector<4x256xf32>
    %22 = arith.mulf %19, %21 : vector<4x256xf32>
    %c12 = arith.constant 12 : index
    %c0_10 = arith.constant 0 : index
    %23 = vector.load %arg10[%c12, %c0_10] : memref<36x256xf32, #tpu.memory_space<vmem>>, vector<4x256xf32>
    tpu.vector_store %arg10[%c12, %c0_10], %22 {strides = array<i32>} : memref<36x256xf32, #tpu.memory_space<vmem>>, vector<4x256xf32>,
    %c16 = arith.constant 16 : index
    %c0_11 = arith.constant 0 : index
    %24 = vector.load %arg10[%c16, %c0_11] : memref<36x256xf32, #tpu.memory_space<vmem>>, vector<4x256xf32>
    tpu.vector_store %arg10[%c16, %c0_11], %1 {strides = array<i32>} : memref<36x256xf32, #tpu.memory_space<vmem>>, vector<4x256xf32>,
    %c255_i32 = arith.constant 255 : i32
    %25 = tpu.dynamic_rotate %1 by %c255_i32 dim 1 : vector<4x256xf32>, i32 -> vector<4x256xf32>
    %26 = vector.extract_strided_slice %2 {offsets = [4, 0], sizes = [1, 256], strides = [1, 1]} : vector<8x256xf32> to vector<1x256xf32>
    %27 = vector.broadcast %26 : vector<1x256xf32> to vector<4x256xf32>
    %28 = arith.mulf %25, %27 : vector<4x256xf32>
    %c20 = arith.constant 20 : index
    %c0_12 = arith.constant 0 : index
    %29 = vector.load %arg10[%c20, %c0_12] : memref<36x256xf32, #tpu.memory_space<vmem>>, vector<4x256xf32>
    tpu.vector_store %arg10[%c20, %c0_12], %28 {strides = array<i32>} : memref<36x256xf32, #tpu.memory_space<vmem>>, vector<4x256xf32>,
    %c241_i32 = arith.constant 241 : i32
    %30 = tpu.dynamic_rotate %1 by %c241_i32 dim 1 : vector<4x256xf32>, i32 -> vector<4x256xf32>
    %31 = vector.extract_strided_slice %2 {offsets = [5, 0], sizes = [1, 256], strides = [1, 1]} : vector<8x256xf32> to vector<1x256xf32>
    %32 = vector.broadcast %31 : vector<1x256xf32> to vector<4x256xf32>
    %33 = arith.mulf %30, %32 : vector<4x256xf32>
    %c24 = arith.constant 24 : index
    %c0_13 = arith.constant 0 : index
    %34 = vector.load %arg10[%c24, %c0_13] : memref<36x256xf32, #tpu.memory_space<vmem>>, vector<4x256xf32>
    tpu.vector_store %arg10[%c24, %c0_13], %33 {strides = array<i32>} : memref<36x256xf32, #tpu.memory_space<vmem>>, vector<4x256xf32>,
    %c240_i32 = arith.constant 240 : i32
    %35 = tpu.dynamic_rotate %1 by %c240_i32 dim 1 : vector<4x256xf32>, i32 -> vector<4x256xf32>
    %36 = vector.extract_strided_slice %2 {offsets = [6, 0], sizes = [1, 256], strides = [1, 1]} : vector<8x256xf32> to vector<1x256xf32>
    %37 = vector.broadcast %36 : vector<1x256xf32> to vector<4x256xf32>
    %38 = arith.mulf %35, %37 : vector<4x256xf32>
    %c28 = arith.constant 28 : index
    %c0_14 = arith.constant 0 : index
    %39 = vector.load %arg10[%c28, %c0_14] : memref<36x256xf32, #tpu.memory_space<vmem>>, vector<4x256xf32>
    tpu.vector_store %arg10[%c28, %c0_14], %38 {strides = array<i32>} : memref<36x256xf32, #tpu.memory_space<vmem>>, vector<4x256xf32>,
    %c239_i32 = arith.constant 239 : i32
    %40 = tpu.dynamic_rotate %1 by %c239_i32 dim 1 : vector<4x256xf32>, i32 -> vector<4x256xf32>
    %41 = vector.extract_strided_slice %2 {offsets = [7, 0], sizes = [1, 256], strides = [1, 1]} : vector<8x256xf32> to vector<1x256xf32>
    %42 = vector.broadcast %41 : vector<1x256xf32> to vector<4x256xf32>
    %43 = arith.mulf %40, %42 : vector<4x256xf32>
    %c32 = arith.constant 32 : index
    %c0_15 = arith.constant 0 : index
    %44 = vector.load %arg10[%c32, %c0_15] : memref<36x256xf32, #tpu.memory_space<vmem>>, vector<4x256xf32>
    tpu.vector_store %arg10[%c32, %c0_15], %43 {strides = array<i32>} : memref<36x256xf32, #tpu.memory_space<vmem>>, vector<4x256xf32>,
    %c0_16 = arith.constant 0 : index
    %c0_17 = arith.constant 0 : index
    %45 = vector.load %arg10[%c0_16, %c0_17] : memref<36x256xf32, #tpu.memory_space<vmem>>, vector<36x256xf32>
    %cst = arith.constant dense<0.000000e+00> : vector<4x256xf32>
    %46 = tpu.matmul %3, %45, %cst {dimension_numbers = #tpu.dot_dimension_numbers<[1], [0], [0], [1], [0, 0, 1, 1], [], []>} : vector<4x36xf32>, vector<36x256xf32>, vector<4x256xf32> -> vector<4x256xf32>
    %c0_18 = arith.constant 0 : index
    %c0_19 = arith.constant 0 : index
    %47 = vector.load %arg4[%c0_18, %c0_19] : memref<4x1xf32, #tpu.memory_space<vmem>>, vector<4x1xf32>
    %c0_20 = arith.constant 0 : index
    %c0_21 = arith.constant 0 : index
    %48 = vector.load %arg5[%c0_20, %c0_21] : memref<4x1xf32, #tpu.memory_space<vmem>>, vector<4x1xf32>
    %cst_22 = arith.constant dense<0.000000e+00> : vector<4xf32>
    %49 = vector.multi_reduction <add>, %46, %cst_22 [1] : vector<4x256xf32> to vector<4xf32>
    %50 = vector.shape_cast %49 : vector<4xf32> to vector<4x1xf32>
    %51 = arith.mulf %46, %46 : vector<4x256xf32>
    %cst_23 = arith.constant dense<0.000000e+00> : vector<4xf32>
    %52 = vector.multi_reduction <add>, %51, %cst_23 [1] : vector<4x256xf32> to vector<4xf32>
    %53 = vector.shape_cast %52 : vector<4xf32> to vector<4x1xf32>
    %cst_24 = arith.constant 3.906250e-03 : f32
    %54 = vector.broadcast %cst_24 : f32 to vector<4x1xf32>
    %55 = arith.mulf %50, %54 : vector<4x1xf32>
    %cst_25 = arith.constant 3.906250e-03 : f32
    %56 = vector.broadcast %cst_25 : f32 to vector<4x1xf32>
    %57 = arith.mulf %53, %56 : vector<4x1xf32>
    %58 = arith.mulf %55, %55 : vector<4x1xf32>
    %59 = arith.subf %57, %58 : vector<4x1xf32>
    %cst_26 = arith.constant 9.99999974E-6 : f32
    %60 = vector.broadcast %cst_26 : f32 to vector<4x1xf32>
    %61 = arith.addf %59, %60 : vector<4x1xf32>
    %62 = math.rsqrt %61 : vector<4x1xf32>
    %63 = arith.mulf %62, %47 : vector<4x1xf32>
    %64 = vector.broadcast %55 : vector<4x1xf32> to vector<4x256xf32>
    %65 = arith.subf %46, %64 : vector<4x256xf32>
    %66 = vector.broadcast %63 : vector<4x1xf32> to vector<4x256xf32>
    %67 = arith.mulf %65, %66 : vector<4x256xf32>
    %68 = vector.broadcast %48 : vector<4x1xf32> to vector<4x256xf32>
    %69 = arith.addf %67, %68 : vector<4x256xf32>
    %cst_27 = arith.constant 0.000000e+00 : f32
    %70 = vector.broadcast %cst_27 : f32 to vector<4x256xf32>
    %71 = arith.cmpf oge, %69, %70 : vector<4x256xf32>
    %cst_28 = arith.constant 5.000000e-02 : f32
    %72 = vector.broadcast %cst_28 : f32 to vector<4x256xf32>
    %73 = arith.mulf %72, %69 : vector<4x256xf32>
    %74 = arith.select %71, %69, %73 : vector<4x256xi1>, vector<4x256xf32>
    %c0_29 = arith.constant 0 : index
    %c0_30 = arith.constant 0 : index
    %75 = vector.load %arg3[%c0_29, %c0_30] : memref<4x36xf32, #tpu.memory_space<vmem>>, vector<4x36xf32>
    %c17_i32_31 = arith.constant 17 : i32
    %76 = tpu.dynamic_rotate %74 by %c17_i32_31 dim 1 : vector<4x256xf32>, i32 -> vector<4x256xf32>
    %77 = vector.extract_strided_slice %2 {offsets = [0, 0], sizes = [1, 256], strides = [1, 1]} : vector<8x256xf32> to vector<1x256xf32>
    %78 = vector.broadcast %77 : vector<1x256xf32> to vector<4x256xf32>
    %79 = arith.mulf %76, %78 : vector<4x256xf32>
    %c0_32 = arith.constant 0 : index
    %c0_33 = arith.constant 0 : index
    %80 = vector.load %arg10[%c0_32, %c0_33] : memref<36x256xf32, #tpu.memory_space<vmem>>, vector<4x256xf32>
    tpu.vector_store %arg10[%c0_32, %c0_33], %79 {strides = array<i32>} : memref<36x256xf32, #tpu.memory_space<vmem>>, vector<4x256xf32>,
    %c16_i32_34 = arith.constant 16 : i32
    %81 = tpu.dynamic_rotate %74 by %c16_i32_34 dim 1 : vector<4x256xf32>, i32 -> vector<4x256xf32>
    %82 = vector.extract_strided_slice %2 {offsets = [1, 0], sizes = [1, 256], strides = [1, 1]} : vector<8x256xf32> to vector<1x256xf32>
    %83 = vector.broadcast %82 : vector<1x256xf32> to vector<4x256xf32>
    %84 = arith.mulf %81, %83 : vector<4x256xf32>
    %c4_35 = arith.constant 4 : index
    %c0_36 = arith.constant 0 : index
    %85 = vector.load %arg10[%c4_35, %c0_36] : memref<36x256xf32, #tpu.memory_space<vmem>>, vector<4x256xf32>
    tpu.vector_store %arg10[%c4_35, %c0_36], %84 {strides = array<i32>} : memref<36x256xf32, #tpu.memory_space<vmem>>, vector<4x256xf32>,
    %c15_i32_37 = arith.constant 15 : i32
    %86 = tpu.dynamic_rotate %74 by %c15_i32_37 dim 1 : vector<4x256xf32>, i32 -> vector<4x256xf32>
    %87 = vector.extract_strided_slice %2 {offsets = [2, 0], sizes = [1, 256], strides = [1, 1]} : vector<8x256xf32> to vector<1x256xf32>
    %88 = vector.broadcast %87 : vector<1x256xf32> to vector<4x256xf32>
    %89 = arith.mulf %86, %88 : vector<4x256xf32>
    %c8_38 = arith.constant 8 : index
    %c0_39 = arith.constant 0 : index
    %90 = vector.load %arg10[%c8_38, %c0_39] : memref<36x256xf32, #tpu.memory_space<vmem>>, vector<4x256xf32>
    tpu.vector_store %arg10[%c8_38, %c0_39], %89 {strides = array<i32>} : memref<36x256xf32, #tpu.memory_space<vmem>>, vector<4x256xf32>,
    %c1_i32_40 = arith.constant 1 : i32
    %91 = tpu.dynamic_rotate %74 by %c1_i32_40 dim 1 : vector<4x256xf32>, i32 -> vector<4x256xf32>
    %92 = vector.extract_strided_slice %2 {offsets = [3, 0], sizes = [1, 256], strides = [1, 1]} : vector<8x256xf32> to vector<1x256xf32>
    %93 = vector.broadcast %92 : vector<1x256xf32> to vector<4x256xf32>
    %94 = arith.mulf %91, %93 : vector<4x256xf32>
    %c12_41 = arith.constant 12 : index
    %c0_42 = arith.constant 0 : index
    %95 = vector.load %arg10[%c12_41, %c0_42] : memref<36x256xf32, #tpu.memory_space<vmem>>, vector<4x256xf32>
    tpu.vector_store %arg10[%c12_41, %c0_42], %94 {strides = array<i32>} : memref<36x256xf32, #tpu.memory_space<vmem>>, vector<4x256xf32>,
    %c16_43 = arith.constant 16 : index
    %c0_44 = arith.constant 0 : index
    %96 = vector.load %arg10[%c16_43, %c0_44] : memref<36x256xf32, #tpu.memory_space<vmem>>, vector<4x256xf32>
    tpu.vector_store %arg10[%c16_43, %c0_44], %74 {strides = array<i32>} : memref<36x256xf32, #tpu.memory_space<vmem>>, vector<4x256xf32>,
    %c255_i32_45 = arith.constant 255 : i32
    %97 = tpu.dynamic_rotate %74 by %c255_i32_45 dim 1 : vector<4x256xf32>, i32 -> vector<4x256xf32>
    %98 = vector.extract_strided_slice %2 {offsets = [4, 0], sizes = [1, 256], strides = [1, 1]} : vector<8x256xf32> to vector<1x256xf32>
    %99 = vector.broadcast %98 : vector<1x256xf32> to vector<4x256xf32>
    %100 = arith.mulf %97, %99 : vector<4x256xf32>
    %c20_46 = arith.constant 20 : index
    %c0_47 = arith.constant 0 : index
    %101 = vector.load %arg10[%c20_46, %c0_47] : memref<36x256xf32, #tpu.memory_space<vmem>>, vector<4x256xf32>
    tpu.vector_store %arg10[%c20_46, %c0_47], %100 {strides = array<i32>} : memref<36x256xf32, #tpu.memory_space<vmem>>, vector<4x256xf32>,
    %c241_i32_48 = arith.constant 241 : i32
    %102 = tpu.dynamic_rotate %74 by %c241_i32_48 dim 1 : vector<4x256xf32>, i32 -> vector<4x256xf32>
    %103 = vector.extract_strided_slice %2 {offsets = [5, 0], sizes = [1, 256], strides = [1, 1]} : vector<8x256xf32> to vector<1x256xf32>
    %104 = vector.broadcast %103 : vector<1x256xf32> to vector<4x256xf32>
    %105 = arith.mulf %102, %104 : vector<4x256xf32>
    %c24_49 = arith.constant 24 : index
    %c0_50 = arith.constant 0 : index
    %106 = vector.load %arg10[%c24_49, %c0_50] : memref<36x256xf32, #tpu.memory_space<vmem>>, vector<4x256xf32>
    tpu.vector_store %arg10[%c24_49, %c0_50], %105 {strides = array<i32>} : memref<36x256xf32, #tpu.memory_space<vmem>>, vector<4x256xf32>,
    %c240_i32_51 = arith.constant 240 : i32
    %107 = tpu.dynamic_rotate %74 by %c240_i32_51 dim 1 : vector<4x256xf32>, i32 -> vector<4x256xf32>
    %108 = vector.extract_strided_slice %2 {offsets = [6, 0], sizes = [1, 256], strides = [1, 1]} : vector<8x256xf32> to vector<1x256xf32>
    %109 = vector.broadcast %108 : vector<1x256xf32> to vector<4x256xf32>
    %110 = arith.mulf %107, %109 : vector<4x256xf32>
    %c28_52 = arith.constant 28 : index
    %c0_53 = arith.constant 0 : index
    %111 = vector.load %arg10[%c28_52, %c0_53] : memref<36x256xf32, #tpu.memory_space<vmem>>, vector<4x256xf32>
    tpu.vector_store %arg10[%c28_52, %c0_53], %110 {strides = array<i32>} : memref<36x256xf32, #tpu.memory_space<vmem>>, vector<4x256xf32>,
    %c239_i32_54 = arith.constant 239 : i32
    %112 = tpu.dynamic_rotate %74 by %c239_i32_54 dim 1 : vector<4x256xf32>, i32 -> vector<4x256xf32>
    %113 = vector.extract_strided_slice %2 {offsets = [7, 0], sizes = [1, 256], strides = [1, 1]} : vector<8x256xf32> to vector<1x256xf32>
    %114 = vector.broadcast %113 : vector<1x256xf32> to vector<4x256xf32>
    %115 = arith.mulf %112, %114 : vector<4x256xf32>
    %c32_55 = arith.constant 32 : index
    %c0_56 = arith.constant 0 : index
    %116 = vector.load %arg10[%c32_55, %c0_56] : memref<36x256xf32, #tpu.memory_space<vmem>>, vector<4x256xf32>
    tpu.vector_store %arg10[%c32_55, %c0_56], %115 {strides = array<i32>} : memref<36x256xf32, #tpu.memory_space<vmem>>, vector<4x256xf32>,
    %c0_57 = arith.constant 0 : index
    %c0_58 = arith.constant 0 : index
    %117 = vector.load %arg10[%c0_57, %c0_58] : memref<36x256xf32, #tpu.memory_space<vmem>>, vector<36x256xf32>
    %cst_59 = arith.constant dense<0.000000e+00> : vector<4x256xf32>
    %118 = tpu.matmul %75, %117, %cst_59 {dimension_numbers = #tpu.dot_dimension_numbers<[1], [0], [0], [1], [0, 0, 1, 1], [], []>} : vector<4x36xf32>, vector<36x256xf32>, vector<4x256xf32> -> vector<4x256xf32>
    %c0_60 = arith.constant 0 : index
    %c0_61 = arith.constant 0 : index
    %119 = vector.load %arg6[%c0_60, %c0_61] : memref<4x1xf32, #tpu.memory_space<vmem>>, vector<4x1xf32>
    %c0_62 = arith.constant 0 : index
    %c0_63 = arith.constant 0 : index
    %120 = vector.load %arg7[%c0_62, %c0_63] : memref<4x1xf32, #tpu.memory_space<vmem>>, vector<4x1xf32>
    %cst_64 = arith.constant dense<0.000000e+00> : vector<4xf32>
    %121 = vector.multi_reduction <add>, %118, %cst_64 [1] : vector<4x256xf32> to vector<4xf32>
    %122 = vector.shape_cast %121 : vector<4xf32> to vector<4x1xf32>
    %123 = arith.mulf %118, %118 : vector<4x256xf32>
    %cst_65 = arith.constant dense<0.000000e+00> : vector<4xf32>
    %124 = vector.multi_reduction <add>, %123, %cst_65 [1] : vector<4x256xf32> to vector<4xf32>
    %125 = vector.shape_cast %124 : vector<4xf32> to vector<4x1xf32>
    %cst_66 = arith.constant 3.906250e-03 : f32
    %126 = vector.broadcast %cst_66 : f32 to vector<4x1xf32>
    %127 = arith.mulf %122, %126 : vector<4x1xf32>
    %cst_67 = arith.constant 3.906250e-03 : f32
    %128 = vector.broadcast %cst_67 : f32 to vector<4x1xf32>
    %129 = arith.mulf %125, %128 : vector<4x1xf32>
    %130 = arith.mulf %127, %127 : vector<4x1xf32>
    %131 = arith.subf %129, %130 : vector<4x1xf32>
    %cst_68 = arith.constant 9.99999974E-6 : f32
    %132 = vector.broadcast %cst_68 : f32 to vector<4x1xf32>
    %133 = arith.addf %131, %132 : vector<4x1xf32>
    %134 = math.rsqrt %133 : vector<4x1xf32>
    %135 = arith.mulf %134, %119 : vector<4x1xf32>
    %136 = vector.broadcast %127 : vector<4x1xf32> to vector<4x256xf32>
    %137 = arith.subf %118, %136 : vector<4x256xf32>
    %138 = vector.broadcast %135 : vector<4x1xf32> to vector<4x256xf32>
    %139 = arith.mulf %137, %138 : vector<4x256xf32>
    %140 = vector.broadcast %120 : vector<4x1xf32> to vector<4x256xf32>
    %141 = arith.addf %139, %140 : vector<4x256xf32>
    %142 = arith.addf %1, %141 : vector<4x256xf32>
    %c0_69 = arith.constant 0 : index
    %c0_70 = arith.constant 0 : index
    %c0_71 = arith.constant 0 : index
    %143 = vector.load %arg9[%c0_69, %c0_70, %c0_71] : memref<1x4x256xf32, #tpu.memory_space<vmem>>, vector<1x4x256xf32>
    %144 = vector.shape_cast %143 : vector<1x4x256xf32> to vector<4x256xf32>
    %145 = vector.shape_cast %142 : vector<4x256xf32> to vector<1x4x256xf32>
    tpu.vector_store %arg9[%c0_69, %c0_70, %c0_71], %145 {strides = array<i32>} : memref<1x4x256xf32, #tpu.memory_space<vmem>>, vector<1x4x256xf32>,
    return
  }
  func.func @transform_0(%arg0: i32) -> (i32, i32, i32) {
    %c0_i32 = arith.constant 0 : i32
    %c0_i32_0 = arith.constant 0 : i32
    %c0_i32_1 = arith.constant 0 : i32
    return %arg0, %c0_i32, %c0_i32_0 : i32, i32, i32
  }
  func.func @transform_1(%arg0: i32) -> (i32, i32) {
    %c0_i32 = arith.constant 0 : i32
    %c0_i32_0 = arith.constant 0 : i32
    %c0_i32_1 = arith.constant 0 : i32
    return %c0_i32, %c0_i32_0 : i32, i32
  }
  func.func @transform_2(%arg0: i32) -> (i32, i32) {
    %c0_i32 = arith.constant 0 : i32
    %c0_i32_0 = arith.constant 0 : i32
    %c0_i32_1 = arith.constant 0 : i32
    return %c0_i32, %c0_i32_0 : i32, i32
  }
  func.func @transform_3(%arg0: i32) -> (i32, i32) {
    %c0_i32 = arith.constant 0 : i32
    %c0_i32_0 = arith.constant 0 : i32
    %c0_i32_1 = arith.constant 0 : i32
    return %c0_i32, %c0_i32_0 : i32, i32
  }
  func.func @transform_4(%arg0: i32) -> (i32, i32) {
    %c0_i32 = arith.constant 0 : i32
    %c0_i32_0 = arith.constant 0 : i32
    %c0_i32_1 = arith.constant 0 : i32
    return %c0_i32, %c0_i32_0 : i32, i32
  }
  func.func @transform_5(%arg0: i32) -> (i32, i32) {
    %c0_i32 = arith.constant 0 : i32
    %c0_i32_0 = arith.constant 0 : i32
    %c0_i32_1 = arith.constant 0 : i32
    return %c0_i32, %c0_i32_0 : i32, i32
  }
  func.func @transform_6(%arg0: i32) -> (i32, i32) {
    %c0_i32 = arith.constant 0 : i32
    %c0_i32_0 = arith.constant 0 : i32
    %c0_i32_1 = arith.constant 0 : i32
    return %c0_i32, %c0_i32_0 : i32, i32
  }
  func.func @transform_7(%arg0: i32) -> (i32, i32) {
    %c0_i32 = arith.constant 0 : i32
    %c0_i32_0 = arith.constant 0 : i32
    %c0_i32_1 = arith.constant 0 : i32
    return %c0_i32, %c0_i32_0 : i32, i32
  }
  func.func @transform_8(%arg0: i32) -> (i32, i32, i32) {
    %c0_i32 = arith.constant 0 : i32
    %c0_i32_0 = arith.constant 0 : i32
    %c0_i32_1 = arith.constant 0 : i32
    return %arg0, %c0_i32, %c0_i32_0 : i32, i32, i32
  }
}

</mosaic_0001>

<bundles_post_ra>
// kernel: tpu_custom_call.1
= control target key start
LH: loop header
LB: loop body
LE: loop exit
PB: predicated region body
PF: predicated region fallthrough
CT: control target
= control target key end

     0   :  { %13 = vsyncpa [#allocation4], 0  ;;  %s1709_s0 = inlined_call_operand.vmem [shape: f32[2,4,256], index: 0, kind: input, shape index: {}]   ;;  %s1710_s1 = inlined_call_operand.hbm [shape: f32[4,36], index: 1, kind: input, shape index: {}]   ;;  %s1711_s2 = inlined_call_operand.hbm [shape: f32[4,36], index: 2, kind: input, shape index: {}]   ;;  %s1712_s3 = inlined_call_operand.vmem [shape: f32[4,1], index: 3, kind: input, shape index: {}]   ;;  %s1713_s4 = inlined_call_operand.vmem [shape: f32[4,1], index: 4, kind: input, shape index: {}]   ;;  %s1714_s5 = inlined_call_operand.vmem [shape: f32[4,1], index: 5, kind: input, shape index: {}]   ;;  %s1715_s6 = inlined_call_operand.vmem [shape: f32[4,1], index: 6, kind: input, shape index: {}]   ;;  %s1716_s7 = inlined_call_operand.vmem [shape: f32[8,256], index: 7, kind: input, shape index: {}]   ;;  %s1717_s8 = inlined_call_operand.hbm [shape: f32[2,4,256], index: 8, kind: output, shape index: {}]  }
   0x1   :  { %14 = vsyncpa [#allocation7], 0 }
   0x2   :  { %15 = vsyncpa [#allocation5], 0 }
   0x3   :  { %17 = vsyncpa [#allocation5 + $0x1], 0  ;;  %s1291_s27 = smov 0   ;;  %s1293_s28 = smov 0  }
   0x4   :  { %s1295_s29 = smov 0   ;;  %s1297_s30 = smov 0  }
   0x5 LB: > { %s1312_s9 = sadd.s32 4294967295, %s1231_s30   ;;  %s988_s10 = sadd.s32 4294967294, %s1231_s30   ;;  %s1231_s30 = sphi %s1297_s30, %s1735_s30   ;;  %s1227_s29 = sphi %s1295_s29, %s1734_s29   ;;  %s1223_s28 = sphi %s1293_s28, %s1733_s28   ;;  %s1219_s27 = sphi %s1291_s27, %s1732_s27  }
   0x6   : > { %s1316_s11 = sadd.s32 1, %s1231_s30   ;;  %s203_s12 = sadd.s32 1, %s1227_s29 }
   0x7   : > { %s200_s13 = ssub.s32 %s1231_s30, %s1316_s11  ;;  %p213_p0 = scmp.ne.s32.totalorder %s1227_s29, %s1223_s28 }
   0x8   : > { %p201_p1 = scmp.eq.s32.totalorder %s200_s13, 0  ;;  %p214_p2 = scmp.eq.s32.totalorder %s1312_s9, 1 }
   0x9   : > { %p219_p3 = scmp.ne.s32.totalorder %s1223_s28, %s1219_s27  ;;  %p220_p4 = scmp.eq.s32.totalorder %s988_s10, 1 }
   0xa   : > { %s1327_s14 = scalar_select %p201_p1, %s1227_s29, %s203_s12  }
   0xb   : > { %p1329_p5 = por %p214_p2, %p213_p0  ;;  %p1333_p6 = por %p220_p4, %p219_p3 }
   0xc   : > { %p989_p7 = scmp.ge.s32.totalorder %s1231_s30, 1  ;;  %p227_p8 = scmp.lt.s32.totalorder %s1231_s30, 3 }
   0xd   : > { %s1721_s15 = scalar_select %p1329_p5, 1, 0 }
   0xe   : > { %s1722_s16 = scalar_select %p1333_p6, 1, 0 }
   0xf   : > { %p1718_p9 = scmp.eq.s32.totalorder %s1312_s9, 0  ;;  %p1340_p10 = pnand %p989_p7, %p227_p8 }
  0x10   : > { %s1233_s18 = smov [#allocation3]   ;;  %s1234_s20 = smov [#allocation6]  }
  0x11   : > { %s1723_s17 = scalar_select %p1340_p10, 1, 0 }
  0x12   : > { %s240_s19 = sshll.u32 %s1233_s18, 4  ;;  %p1038_p11 = pneg %p1340_p10  ;;  %s241_s19 = int_to_ptr.vmem [resolvable:$true] %s240_s19 }
  0x13   : > { %s251_s21 = sshll.u32 %s1234_s20, 4  ;;  %s1105_s25 = scalar_lea.hbm %s1710_s1, 64  ;;  %s1352_s21 = int_to_ptr.vmem [resolvable:$true] %s251_s21 }
  0x14   : > { %p1348_p12 = pnand %p1718_p9, %p1038_p11  ;;  %p1106_p13 = scmp.ne.s32.totalorder %s1710_s1, %s1105_s25 }
  0x15   : > { %p1112_p3 = scmp.lt.u32.totalorder %s1105_s25, %s1710_s1 }
  0x16   : > { %p1107_p0 = pneg %p1348_p12 }
  0x18   : > { %p1108_p1 = pnand %p1107_p0, %p1106_p13 }
  0x1a   : > { %p1109_p2 = pneg %p1108_p1 }
  0x1c   : > { %p1114_p4 = pnand %p1112_p3, %p1109_p2 }
  0x1e   : > { %1117 = shalt.err (!%p1114_p4)
}
  0x1f   : > { %s1118_s18 = scalar_lea.vmem %s241_s19, 64  ;;  %p1126_p9 = scmp.lt.s32.totalorder %s241_s19, %s241_s19 }
  0x20   : > { %p1119_p7 = scmp.ne.s32.totalorder %s241_s19, %s1118_s18  ;;  %p1127_p6 = scmp.lt.s32.totalorder %s1118_s18, %s1118_s18 }
  0x22   : > { %p1121_p8 = pnand %p1119_p7, %p1107_p0  ;;  %p1128_p5 = por %p1127_p6, %p1126_p9 }
  0x24   : > { %p1122_p11 = pneg %p1121_p8 }
  0x26   : > { %p1129_p10 = pnand %p1128_p5, %p1122_p11 }
  0x28   : > { %1132 = shalt.err (!%p1129_p10)
}
  0x29   : > { %1041 = dma.hbm_to_vmem [thread:$0]  (!%p1348_p12), %s1710_s1, 64, %s241_s19, [#allocation4]  }
  0x2a   : > { %s1133_s26 = scalar_lea.hbm %s1711_s2, 64 }
  0x2b   : > { %p1134_p13 = scmp.ne.s32.totalorder %s1711_s2, %s1133_s26  ;;  %p1140_p9 = scmp.lt.u32.totalorder %s1133_s26, %s1711_s2 }
  0x2d   : > { %p1136_p6 = pnand %p1134_p13, %p1107_p0 }
  0x2f   : > { %p1137_p5 = pneg %p1136_p6 }
  0x31   : > { %p1142_p10 = pnand %p1140_p9, %p1137_p5 }
  0x33   : > { %1145 = shalt.err (!%p1142_p10)
}
  0x34   : > { %s1146_s19 = scalar_lea.vmem %s1352_s21, 64  ;;  %p1154_p4 = scmp.lt.s32.totalorder %s1352_s21, %s1352_s21 }
  0x35   : > { %p1147_p1 = scmp.ne.s32.totalorder %s1352_s21, %s1146_s19  ;;  %p1155_p7 = scmp.lt.s32.totalorder %s1146_s19, %s1146_s19 }
  0x37   : > { %p1149_p2 = pnand %p1147_p1, %p1107_p0  ;;  %p1156_p8 = por %p1155_p7, %p1154_p4 }
  0x39   : > { %p1150_p3 = pneg %p1149_p2 }
  0x3b   : > { %p1157_p11 = pnand %p1156_p8, %p1150_p3 }
  0x3d   : > { %1160 = shalt.err (!%p1157_p11)
}
  0x3e   : > { %1044 = dma.hbm_to_vmem [thread:$0]  (!%p1348_p12), %s1711_s2, 64, %s1352_s21, [#allocation7]  }
  0x3f   : > { %p1725_p13 = scmp.ne.s32.totalorder %s1723_s17, 0 }
  0x40   : > { %p1726_p6 = scmp.eq.s32.totalorder (!%p1725_p13), %s1312_s9, 0 }
  0x41   : > { %287 = sbr.rel (%p1725_p13) target bundleno = 1455 (0x5af), region = 52 }
  0x48   : > { %1206 = dma.done.wait (%p1726_p6), [#allocation4], 64   ;;  %p1727_p0 = pmov %p1726_p6 }
  0x4a   : > { %1208 = vsyncadd (%p1727_p0), [#allocation4], 4294967232  ;;  %p1728_p5 = pmov %p1727_p0 }
  0x4b   : > { %p1729_p9 = pmov %p1727_p0 }
  0x4c   : > { %1210 = dma.done.wait (%p1728_p5), [#allocation7], 64  }
  0x4d   : > { %1212 = vsyncadd (%p1729_p9), [#allocation7], 4294967232  ;;  %p325_p10 = scmp.lt.s32.totalorder %s1312_s9, 1  ;;  %s1235_s26 = smov 1   ;;  %v1243_v2 = vmov 0.0   ;;  %v341_v3 = vlaneseq  ;;  %v1453_v7 = vld [vmem:[%s1716_s7] sm:$0xff] }
  0x4e   : > { %s1236_s10 = smov 16   ;;  %s1237_s12 = smov 17   ;;  %602 = vmatprep.mubr.f32.mxu0 %v1243_v2  ;;  %842 = vmatprep.mubr.f32.mxu1 %v1243_v2  ;;  %v1458_v8 = vld [vmem:[%s1716_s7 + $0x8] sm:$0xff]  ;;  %vm531_vm8 = vcmask 1043456   ;;  %vm527_vm9 = vcmask 293888  }
  0x4f   : > { %s326_s22 = scalar_select %p325_p10, %s1312_s9, 1  ;;  %v1445_v4 = vshrl.u32 %v341_v3, 7  ;;  %v1447_v5 = vand.u32 127, %v341_v3 }
  0x50   : > { %s1238_s13 = smov 15   ;;  %s1239_s18 = smov 127  }
  0x51   : > { %s1010_s21 = sshll.u32 %s326_s22, 3  ;;  %s1240_s19 = smov 112   ;;  %v411_v6 = vsub.s32 3, %v1445_v4  ;;  %v348_v11 = vsub.s32 0, %v1445_v4  ;;  %vm406_vm0 = vcmp.lt.s32.totalorder %v1447_v5, 1  ;;  %v367_v14 = vsub.s32 1, %v1445_v4 }
  0x52   : > { %s329_s25 = scalar_lea.vmem %s1709_s0, %s1010_s21  ;;  %s1241_s20 = smov 113   ;;  %vm343_vm1 = vcmp.lt.s32.totalorder %v1447_v5, 17  ;;  %vm362_vm2 = vcmp.lt.s32.totalorder %v1447_v5, 16  ;;  %v392_v17 = vsub.s32 2, %v1445_v4  ;;  %vm387_vm3 = vcmp.lt.s32.totalorder %v1447_v5, 15 }
  0x53   : > { %v1416_v0 = vld [vmem:[%s329_s25] sm:$0xff]  ;;  %s1242_s23 = smov 111   ;;  %v1463_v12 = vrot.slane %v1453_v7, %v411_v6  ;;  %v1466_v13 = vrot.slane %v1458_v8, %v411_v6  ;;  %v1477_v20 = vrot.slane %v1453_v7, %v348_v11  ;;  %v1480_v21 = vrot.slane %v1458_v8, %v348_v11  ;;  %p1730_p1 = scmp.ne.s32.totalorder %s1721_s15, 0 }
  0x54   : > { %402 = vrot.lane.b32.xlu1 %v1416_v0, %s1235_s26  ;;  %427 = vst [vmem:[#allocation2 + $0x20] sm:$0xf] %v1416_v0  ;;  %358 = vrot.lane.b32.xlu0 %v1416_v0, %s1236_s10  ;;  %v335_v1 = vcombine.high %v1416_v0, %v1416_v0  ;;  %v1485_v24 = vrot.slane %v1453_v7, %v367_v14  ;;  %v438_v26 = vsub.s32 4, %v1445_v4  ;;  %vm433_vm4 = vcmp.lt.s32.totalorder %v1447_v5, 127 }
  0x55   : > { %v1488_v25 = vrot.slane %v1458_v8, %v367_v14  ;;  %v1493_v31 = vrot.slane %v1453_v7, %v392_v17  ;;  %v1496_v32 = vrot.slane %v1458_v8, %v392_v17  ;;  %v482_v51 = vsub.s32 6, %v1445_v4 }
  0x56   : > { %428 = vst [vmem:[#allocation2 + $0x28] sm:$0xf] %v335_v1  ;;  %v1516_v47 = vrot.slane %v1453_v7, %v438_v26  ;;  %v1521_v50 = vrot.slane %v1458_v8, %v438_v26  ;;  %vm477_vm5 = vcmp.lt.s32.totalorder %v1447_v5, 112  ;;  %v463_v56 = vsub.s32 5, %v1445_v4 }
  0x57   : > { %v1533_v59 = vrot.slane %v1453_v7, %v482_v51  ;;  %v1536_v60 = vrot.slane %v1458_v8, %v482_v51  ;;  %vm458_vm6 = vcmp.lt.s32.totalorder %v1447_v5, 113  ;;  %vm502_vm7 = vcmp.lt.s32.totalorder %v1447_v5, 111 }
  0x58   : > { %337 = vrot.lane.b32.xlu0 %v1416_v0, %s1237_s12  ;;  %404 = vrot.lane.b32.xlu1 %v335_v1, %s1235_s26  ;;  %v1544_v6 = vrot.slane %v1453_v7, %v463_v56  ;;  %v1549_v11 = vrot.slane %v1458_v8, %v463_v56 }
  0x5c   : > { %339 = vrot.lane.b32.xlu1 %v335_v1, %s1237_s12  ;;  %360 = vrot.lane.b32.xlu0 %v335_v1, %s1236_s10 }
  0x60   : > { %385 = vrot.lane.b32.xlu1 %v335_v1, %s1238_s13  ;;  %383 = vrot.lane.b32.xlu0 %v1416_v0, %s1238_s13 }
  0x64   : > { %431 = vrot.lane.b32.xlu1 %v335_v1, %s1239_s18  ;;  %429 = vrot.lane.b32.xlu0 %v1416_v0, %s1239_s18 }
  0x68   : > { %475 = vrot.lane.b32.xlu1 %v335_v1, %s1240_s19  ;;  %473 = vrot.lane.b32.xlu0 %v1416_v0, %s1240_s19 }
  0x6c   : > { %456 = vrot.lane.b32.xlu1 %v335_v1, %s1241_s20  ;;  %454 = vrot.lane.b32.xlu0 %v1416_v0, %s1241_s20 }
  0x70   : > { %500 = vrot.lane.b32.xlu1 %v335_v1, %s1242_s23  ;;  %498 = vrot.lane.b32.xlu0 %v1416_v0, %s1242_s23 }
  0xc6   : > { %v403_v9 = vpop.permute.xlu1 %402  ;;  %v359_v10 = vpop.permute.xlu0 %358 }
  0xca   : > { %v338_v15 = vpop.permute.xlu0 %337  ;;  %v405_v16 = vpop.permute.xlu1 %404 }
  0xcb   : > { %v407_v18 = vsel %vm406_vm0, %v403_v9, %v405_v16  ;;  %v408_v19 = vsel %vm406_vm0, %v405_v16, %v403_v9 }
  0xcc   : > { %v417_v22 = vmul.f32 %v1463_v12, %v408_v19  ;;  %v418_v23 = vmul.f32 %v1466_v13, %v407_v18 }
  0xce   : > { %v421_v27 = vrot.slane %v417_v22, 4  ;;  %v422_v28 = vrot.slane %v418_v23, 4  ;;  %v340_v29 = vpop.permute.xlu1 %339  ;;  %v361_v30 = vpop.permute.xlu0 %360 }
  0xcf   : > { %v344_v33 = vsel %vm343_vm1, %v338_v15, %v340_v29  ;;  %v345_v34 = vsel %vm343_vm1, %v340_v29, %v338_v15  ;;  %v363_v35 = vsel %vm362_vm2, %v359_v10, %v361_v30  ;;  %v364_v36 = vsel %vm362_vm2, %v361_v30, %v359_v10 }
  0xd0   : > { %425 = vst [vmem:[#allocation2 + $0x10] sm:$0xf0] %v421_v27  ;;  %426 = vst [vmem:[#allocation2 + $0x18] sm:$0xf0] %v422_v28  ;;  %v354_v37 = vmul.f32 %v1477_v20, %v345_v34  ;;  %v355_v38 = vmul.f32 %v1480_v21, %v344_v33  ;;  %v373_v39 = vmul.f32 %v1485_v24, %v364_v36  ;;  %v507_v15 = vsub.s32 7, %v1445_v4 }
  0xd1   : > { %v374_v40 = vmul.f32 %v1488_v25, %v363_v35 }
  0xd2   : > { %356 = vst [vmem:[#allocation2] sm:$0xf] %v354_v37  ;;  %357 = vst [vmem:[#allocation2 + $0x8] sm:$0xf] %v355_v38  ;;  %v377_v41 = vrot.slane %v373_v39, 4  ;;  %v386_v43 = vpop.permute.xlu1 %385  ;;  %v384_v44 = vpop.permute.xlu0 %383  ;;  %v1560_v34 = vrot.slane %v1453_v7, %v507_v15  ;;  %v1563_v35 = vrot.slane %v1458_v8, %v507_v15 }
  0xd3   : > { %v378_v42 = vrot.slane %v374_v40, 4  ;;  %v388_v45 = vsel %vm387_vm3, %v384_v44, %v386_v43  ;;  %v389_v46 = vsel %vm387_vm3, %v386_v43, %v384_v44 }
  0xd4   : > { %381 = vst [vmem:[#allocation2] sm:$0xf0] %v377_v41  ;;  %v398_v48 = vmul.f32 %v1493_v31, %v389_v46  ;;  %v399_v49 = vmul.f32 %v1496_v32, %v388_v45 }
  0xd5   : > { %382 = vst [vmem:[#allocation2 + $0x8] sm:$0xf0] %v378_v42 }
  0xd6   : > { %400 = vst [vmem:[#allocation2 + $0x10] sm:$0xf] %v398_v48  ;;  %401 = vst [vmem:[#allocation2 + $0x18] sm:$0xf] %v399_v49  ;;  %v432_v52 = vpop.permute.xlu1 %431  ;;  %v430_v53 = vpop.permute.xlu0 %429  ;;  %v333_v49 = vld [vmem:[#allocation3] sm:$0xf] }
  0xd7   : > { %v434_v54 = vsel %vm433_vm4, %v430_v53, %v432_v52  ;;  %v435_v55 = vsel %vm433_vm4, %v432_v52, %v430_v53 }
  0xd8   : > { %v444_v57 = vmul.f32 %v1516_v47, %v434_v54  ;;  %v445_v58 = vmul.f32 %v1521_v50, %v435_v55 }
  0xda   : > { %v448_v61 = vrot.slane %v444_v57, 4  ;;  %v449_v62 = vrot.slane %v445_v58, 4  ;;  %v476_v63 = vpop.permute.xlu1 %475  ;;  %v474_v1 = vpop.permute.xlu0 %473 }
  0xdb   : > { %v478_v2 = vsel %vm477_vm5, %v474_v1, %v476_v63  ;;  %v479_v3 = vsel %vm477_vm5, %v476_v63, %v474_v1  ;;  %v517_v17 = vld [vmem:[#allocation2] sm:$0xff]  ;;  %v1244_v63 = vmov 0  }
  0xdc   : > { %452 = vst [vmem:[#allocation2 + $0x20] sm:$0xf0] %v448_v61  ;;  %453 = vst [vmem:[#allocation2 + $0x28] sm:$0xf0] %v449_v62  ;;  %v488_v9 = vmul.f32 %v1533_v59, %v478_v2  ;;  %v489_v10 = vmul.f32 %v1536_v60, %v479_v3  ;;  %v518_v14 = vld [vmem:[#allocation2 + $0x8] sm:$0xff]  ;;  %1098 = vset.pattern.permute.xlu0 %v1244_v63  ;;  %1099 = vset.pattern.permute.xlu1 %v1244_v63 }
  0xdd   : > { %v520_v16 = vld [vmem:[#allocation2 + $0x18] sm:$0xff]  ;;  %v519_v18 = vld [vmem:[#allocation2 + $0x10] sm:$0xff]  ;;  %v610_v1 = vld [vmem:[%s1713_s4] sm:$0xf] }
  0xde   : > { %v492_v19 = vrot.slane %v488_v9, 4  ;;  %v493_v22 = vrot.slane %v489_v10, 4  ;;  %v457_v23 = vpop.permute.xlu1 %456  ;;  %v455_v26 = vpop.permute.xlu0 %454  ;;  %v1012_v27 = vpack.c.bf16 %v520_v16, %v518_v14  ;;  %v1014_v28 = vpack.c.bf16 %v519_v18, %v517_v17 }
  0xdf   : > { %v459_v29 = vsel %vm458_vm6, %v455_v26, %v457_v23  ;;  %v460_v30 = vsel %vm458_vm6, %v457_v23, %v455_v26 }
  0xe0   : > { %496 = vst [vmem:[#allocation2 + $0x30] sm:$0xf0] %v492_v19  ;;  %497 = vst [vmem:[#allocation2 + $0x38] sm:$0xf0] %v493_v22  ;;  %v469_v4 = vmul.f32 %v1544_v6, %v459_v29  ;;  %v470_v33 = vmul.f32 %v1549_v11, %v460_v30  ;;  %1013 = vmatprep.subr.bf16.mxu0 %v1012_v27  ;;  %v609_v19 = vld [vmem:[%s1712_s3] sm:$0xf] }
  0xe1   : > { %1015 = vmatpush1.bf16.msra.mxu0 %v1014_v28 }
  0xe2   : > { %471 = vst [vmem:[#allocation2 + $0x30] sm:$0xf] %v469_v4  ;;  %472 = vst [vmem:[#allocation2 + $0x38] sm:$0xf] %v470_v33  ;;  %v501_v36 = vpop.permute.xlu1 %500  ;;  %v499_v37 = vpop.permute.xlu0 %498 }
  0xe3   : > { %v503_v38 = vsel %vm502_vm7, %v499_v37, %v501_v36  ;;  %v504_v39 = vsel %vm502_vm7, %v501_v36, %v499_v37  ;;  %v522_v7 = vld [vmem:[#allocation2 + $0x28] sm:$0xff]  ;;  %v521_v42 = vld [vmem:[#allocation2 + $0x20] sm:$0xff] }
  0xe4   : > { %v513_v40 = vmul.f32 %v1560_v34, %v503_v38  ;;  %v514_v41 = vmul.f32 %v1563_v35, %v504_v39 }
  0xe6   : > { %515 = vst [vmem:[#allocation2 + $0x40] sm:$0xf] %v513_v40  ;;  %516 = vst [vmem:[#allocation2 + $0x48] sm:$0xf] %v514_v41 }
  0xe9   : > { %v524_v8 = vld [vmem:[#allocation2 + $0x38] sm:$0xff]  ;;  %v523_v43 = vld [vmem:[#allocation2 + $0x30] sm:$0xff] }
  0xea   : > { %v1016_v44 = vpack.c.bf16 %v524_v8, %v522_v7  ;;  %v1018_v45 = vpack.c.bf16 %v523_v43, %v521_v42 }
  0xec   : > { %1017 = vmatprep.subr.bf16.mxu0 %v1016_v44 }
  0xed   : > { %1019 = vmatpush1.bf16.msra.mxu0 %v1018_v45  ;;  %v526_v46 = vld [vmem:[#allocation2 + $0x48] sm:$0xf]  ;;  %v525_v48 = vld [vmem:[#allocation2 + $0x40] sm:$0xf] }
  0xee   : > { %999 = vmatprep.subr.msk.mxu0 %vm531_vm8, %v526_v46 }
  0xf1   : > { %1000 = vmatpush1.msk.msra.mxu0 %vm531_vm8, %v525_v48 }
  0xf2   : > { %1001 = vmatmul.mubr.msk.f32.vlgmr.msra.gmra.mrb[0].mxu0 %vm527_vm9, %v333_v49 }
 0x1c5   : > { %v604_v51 = vpop.f32.mrb[0].mxu0 }
 0x1c6   : > { %v616_v52 = vmul.f32 %v604_v51, %v604_v51  ;;  %v606_v53 = vpop.f32.mrb[1].mxu0  ;;  %v611_v54 = vsel %vm531_vm8, %v604_v51, 0.0 }
 0x1c7   : > { %v612_v55 = vsel %vm531_vm8, %v606_v53, 0.0  ;;  %v617_v56 = vmul.f32 %v606_v53, %v606_v53 }
 0x1c8   : > { %v613_v57 = vadd.f32 %v612_v55, %v611_v54  ;;  %v618_v58 = vsel %vm531_vm8, %v616_v52, 0.0 }
 0x1c9   : > { %v619_v61 = vsel %vm531_vm8, %v617_v56, 0.0 }
 0x1ca   : > { %614 = vadd.xlane.f32.xlu0 %v613_v57  ;;  %v620_v62 = vadd.f32 %v619_v61, %v618_v58 }
 0x1cc   : > { %621 = vadd.xlane.f32.xlu1 %v620_v62 }
 0x1dd   : > { %641 = vperm.xlu1 %1099, %v610_v1  }
 0x257   : > { %v615_v2 = vpop.xlane.xlu0 %614 }
 0x258   : > { %v623_v3 = vmul.f32 0.00390625, %v615_v2 }
 0x259   : > { %v622_v9 = vpop.xlane.xlu1 %621 }
 0x25a   : > { %v624_v10 = vmul.f32 0.00390625, %v622_v9  ;;  %v625_v14 = vmul.f32 %v623_v3, %v623_v3  ;;  %v630_v15 = vsub.f32 %v604_v51, %v623_v3  ;;  %v631_v16 = vsub.f32 %v606_v53, %v623_v3 }
 0x25c   : > { %v626_v17 = vsub.f32 %v624_v10, %v625_v14 }
 0x25d   : > { %v642_v27 = vpop.permute.xlu1 %641 }
 0x25e   : > { %v627_v18 = vadd.f32 1e-05, %v626_v17 }
 0x260   : > { %1101 = vrsqrt.f32 %v627_v18 }
 0x26a   : > { %v1102_v22 = vpop.eup %1101 }
 0x26b   : > { %v629_v23 = vmul.f32 %v1102_v22, %v609_v19 }
 0x26d   : > { %634 = vperm.xlu0 %1098, %v629_v23  }
 0x2ec   : > { %v635_v26 = vpop.permute.xlu0 %634 }
 0x2ed   : > { %v637_v28 = vmul.f32 %v635_v26, %v630_v15  ;;  %v638_v29 = vmul.f32 %v635_v26, %v631_v16 }
 0x2ef   : > { %v644_v30 = vadd.f32 %v642_v27, %v637_v28  ;;  %v645_v4 = vadd.f32 %v642_v27, %v638_v29 }
 0x2f1   : > { %vm646_vm10 = vcmp.ge.f32.partialorder %v644_v30, 0.0  ;;  %vm647_vm11 = vcmp.ge.f32.partialorder %v645_v4, 0.0  ;;  %v648_v33 = vmul.f32 0.05, %v644_v30  ;;  %v649_v36 = vmul.f32 0.05, %v645_v4 }
 0x2f3   : > { %v650_v37 = vsel %vm646_vm10, %v644_v30, %v648_v33  ;;  %v651_v38 = vsel %vm647_vm11, %v645_v4, %v649_v36 }
 0x2f4   : > { %705 = vst [vmem:[#allocation2 + $0x20] sm:$0xf] %v650_v37  ;;  %706 = vst [vmem:[#allocation2 + $0x28] sm:$0xf] %v651_v38  ;;  %679 = vrot.lane.b32.xlu0 %v650_v37, %s1238_s13  ;;  %663 = vrot.lane.b32.xlu1 %v650_v37, %s1236_s10 }
 0x2f8   : > { %707 = vrot.lane.b32.xlu0 %v650_v37, %s1239_s18  ;;  %665 = vrot.lane.b32.xlu1 %v651_v38, %s1236_s10 }
 0x2fc   : > { %733 = vrot.lane.b32.xlu0 %v650_v37, %s1240_s19  ;;  %689 = vrot.lane.b32.xlu1 %v650_v37, %s1235_s26 }
 0x300   : > { %723 = vrot.lane.b32.xlu0 %v650_v37, %s1241_s20  ;;  %691 = vrot.lane.b32.xlu1 %v651_v38, %s1235_s26 }
 0x304   : > { %749 = vrot.lane.b32.xlu0 %v650_v37, %s1242_s23  ;;  %653 = vrot.lane.b32.xlu1 %v650_v37, %s1237_s12 }
 0x308   : > { %655 = vrot.lane.b32.xlu1 %v651_v38, %s1237_s12 }
 0x30c   : > { %681 = vrot.lane.b32.xlu1 %v651_v38, %s1238_s13 }
 0x310   : > { %709 = vrot.lane.b32.xlu1 %v651_v38, %s1239_s18  ;;  %s322_s18 = sand.u32 1, %s1223_s28  }
 0x311   : > { %s893_s24 = scalar_lea.sflag [#allocation5], %s322_s18 }
 0x314   : > { %735 = vrot.lane.b32.xlu1 %v651_v38, %s1240_s19  ;;  %s996_s19 = sshll.u32 %s322_s18, 3 }
 0x318   : > { %725 = vrot.lane.b32.xlu1 %v651_v38, %s1241_s20  ;;  %s1011_s20 = sshll.u32 %s1312_s9, 7  ;;  %s1245_s9 = smov [#allocation8]  }
 0x319   : > { %s1667_s21 = scalar_lea.hbm %s1717_s8, %s1011_s20  ;;  %s1165_s10 = sshll.u32 %s1245_s9, 4  ;;  %s1166_s10 = int_to_ptr.vmem [resolvable:$false] %s1165_s10 }
 0x31a   : > { %s1167_s12 = scalar_lea.vmem %s1166_s10, 256 }
 0x31c   : > { %751 = vrot.lane.b32.xlu1 %v651_v38, %s1242_s23  ;;  %s324_s23 = scalar_lea.vmem [#allocation8], %s996_s19 }
 0x31d   : > { %s907_s17 = sshll.u32 %s324_s23, 4  ;;  %s1669_s17 = int_to_ptr.vmem [resolvable:$true] %s907_s17 }
 0x31e   : > { %s1161_s26 = scalar_lea.vmem %s1669_s17, 128  ;;  %p1168_p4 = scmp.lt.s32.totalorder %s1669_s17, %s1166_s10 }
 0x31f   : > { %p1162_p12 = scmp.ne.s32.totalorder %s1669_s17, %s1161_s26  ;;  %p1169_p7 = scmp.lt.s32.totalorder %s1167_s12, %s1161_s26 }
 0x321   : > { %p1163_p2 = pnand %p1162_p12, %p1730_p1  ;;  %p1170_p8 = por %p1169_p7, %p1168_p4 }
 0x323   : > { %p1164_p3 = pneg %p1163_p2 }
 0x325   : > { %p1171_p11 = pnand %p1170_p8, %p1164_p3 }
 0x366   : > { %v664_v39 = vpop.permute.xlu1 %663  ;;  %v680_v53 = vpop.permute.xlu0 %679 }
 0x36a   : > { %v666_v40 = vpop.permute.xlu1 %665  ;;  %v708_v58 = vpop.permute.xlu0 %707 }
 0x36b   : > { %v667_v41 = vsel %vm362_vm2, %v664_v39, %v666_v40  ;;  %v668_v7 = vsel %vm362_vm2, %v666_v40, %v664_v39 }
 0x36c   : > { %v669_v8 = vmul.f32 %v668_v7, %v1485_v24  ;;  %v670_v42 = vmul.f32 %v667_v41, %v1488_v25 }
 0x36e   : > { %v673_v43 = vrot.slane %v669_v8, 4  ;;  %v674_v44 = vrot.slane %v670_v42, 4  ;;  %v690_v45 = vpop.permute.xlu1 %689  ;;  %v734_v3 = vpop.permute.xlu0 %733 }
 0x370   : > { %677 = vst [vmem:[#allocation2] sm:$0xf0] %v673_v43  ;;  %678 = vst [vmem:[#allocation2 + $0x8] sm:$0xf0] %v674_v44 }
 0x372   : > { %v692_v46 = vpop.permute.xlu1 %691  ;;  %v724_v18 = vpop.permute.xlu0 %723 }
 0x373   : > { %v693_v48 = vsel %vm406_vm0, %v690_v45, %v692_v46  ;;  %v694_v49 = vsel %vm406_vm0, %v692_v46, %v690_v45  ;;  %v652_v46 = vld [vmem:[#allocation6] sm:$0xf] }
 0x374   : > { %v695_v51 = vmul.f32 %v694_v49, %v1463_v12  ;;  %v696_v52 = vmul.f32 %v693_v48, %v1466_v13 }
 0x376   : > { %v699_v24 = vrot.slane %v695_v51, 4  ;;  %v700_v54 = vrot.slane %v696_v52, 4  ;;  %v654_v25 = vpop.permute.xlu1 %653  ;;  %v750_v37 = vpop.permute.xlu0 %749 }
 0x378   : > { %703 = vst [vmem:[#allocation2 + $0x10] sm:$0xf0] %v699_v24  ;;  %704 = vst [vmem:[#allocation2 + $0x18] sm:$0xf0] %v700_v54 }
 0x37a   : > { %v656_v55 = vpop.permute.xlu1 %655 }
 0x37b   : > { %v657_v56 = vsel %vm343_vm1, %v654_v25, %v656_v55  ;;  %v658_v57 = vsel %vm343_vm1, %v656_v55, %v654_v25  ;;  %v850_v55 = vld [vmem:[%s1715_s6] sm:$0xf] }
 0x37c   : > { %v659_v61 = vmul.f32 %v658_v57, %v1477_v20  ;;  %v660_v12 = vmul.f32 %v657_v56, %v1480_v21 }
 0x37e   : > { %661 = vst [vmem:[#allocation2] sm:$0xf] %v659_v61  ;;  %662 = vst [vmem:[#allocation2 + $0x8] sm:$0xf] %v660_v12  ;;  %v682_v13 = vpop.permute.xlu1 %681 }
 0x37f   : > { %v683_v62 = vsel %vm387_vm3, %v680_v53, %v682_v13  ;;  %v684_v63 = vsel %vm387_vm3, %v682_v13, %v680_v53 }
 0x380   : > { %v685_v1 = vmul.f32 %v684_v63, %v1493_v31  ;;  %v686_v2 = vmul.f32 %v683_v62, %v1496_v32 }
 0x382   : > { %687 = vst [vmem:[#allocation2 + $0x10] sm:$0xf] %v685_v1  ;;  %688 = vst [vmem:[#allocation2 + $0x18] sm:$0xf] %v686_v2  ;;  %v710_v9 = vpop.permute.xlu1 %709  ;;  %v849_v2 = vld [vmem:[%s1714_s5] sm:$0xf] }
 0x383   : > { %v711_v20 = vsel %vm433_vm4, %v708_v58, %v710_v9  ;;  %v712_v21 = vsel %vm433_vm4, %v710_v9, %v708_v58 }
 0x384   : > { %v713_v10 = vmul.f32 %v711_v20, %v1516_v47  ;;  %v714_v14 = vmul.f32 %v712_v21, %v1521_v50 }
 0x385   : > { %v760_v23 = vld [vmem:[#allocation2 + $0x8] sm:$0xff]  ;;  %v759_v26 = vld [vmem:[#allocation2] sm:$0xff] }
 0x386   : > { %v717_v15 = vrot.slane %v713_v10, 4  ;;  %v718_v16 = vrot.slane %v714_v14, 4  ;;  %v736_v17 = vpop.permute.xlu1 %735 }
 0x387   : > { %v737_v31 = vsel %vm477_vm5, %v734_v3, %v736_v17  ;;  %v738_v32 = vsel %vm477_vm5, %v736_v17, %v734_v3 }
 0x388   : > { %721 = vst [vmem:[#allocation2 + $0x20] sm:$0xf0] %v717_v15  ;;  %722 = vst [vmem:[#allocation2 + $0x28] sm:$0xf0] %v718_v16  ;;  %v739_v19 = vmul.f32 %v737_v31, %v1533_v59  ;;  %v740_v22 = vmul.f32 %v738_v32, %v1536_v60 }
 0x389   : > { %v762_v47 = vld [vmem:[#allocation2 + $0x18] sm:$0xff]  ;;  %v761_v50 = vld [vmem:[#allocation2 + $0x10] sm:$0xff] }
 0x38a   : > { %v743_v27 = vrot.slane %v739_v19, 4  ;;  %v744_v28 = vrot.slane %v740_v22, 4  ;;  %v726_v29 = vpop.permute.xlu1 %725  ;;  %v1020_v30 = vpack.c.bf16 %v762_v47, %v760_v23  ;;  %v1022_v4 = vpack.c.bf16 %v761_v50, %v759_v26 }
 0x38b   : > { %v727_v33 = vsel %vm458_vm6, %v724_v18, %v726_v29  ;;  %v728_v36 = vsel %vm458_vm6, %v726_v29, %v724_v18 }
 0x38c   : > { %747 = vst [vmem:[#allocation2 + $0x30] sm:$0xf0] %v743_v27  ;;  %748 = vst [vmem:[#allocation2 + $0x38] sm:$0xf0] %v744_v28  ;;  %v729_v59 = vmul.f32 %v727_v33, %v1544_v6  ;;  %v730_v60 = vmul.f32 %v728_v36, %v1549_v11  ;;  %1021 = vmatprep.subr.bf16.mxu1 %v1020_v30 }
 0x38d   : > { %1023 = vmatpush1.bf16.msra.mxu1 %v1022_v4 }
 0x38e   : > { %731 = vst [vmem:[#allocation2 + $0x30] sm:$0xf] %v729_v59  ;;  %732 = vst [vmem:[#allocation2 + $0x38] sm:$0xf] %v730_v60  ;;  %v752_v38 = vpop.permute.xlu1 %751 }
 0x38f   : > { %v753_v39 = vsel %vm502_vm7, %v750_v37, %v752_v38  ;;  %v754_v40 = vsel %vm502_vm7, %v752_v38, %v750_v37  ;;  %v764_v6 = vld [vmem:[#allocation2 + $0x28] sm:$0xff]  ;;  %v763_v8 = vld [vmem:[#allocation2 + $0x20] sm:$0xff] }
 0x390   : > { %v755_v41 = vmul.f32 %v753_v39, %v1560_v34  ;;  %v756_v7 = vmul.f32 %v754_v40, %v1563_v35 }
 0x392   : > { %757 = vst [vmem:[#allocation2 + $0x40] sm:$0xf] %v755_v41  ;;  %758 = vst [vmem:[#allocation2 + $0x48] sm:$0xf] %v756_v7 }
 0x395   : > { %v766_v11 = vld [vmem:[#allocation2 + $0x38] sm:$0xff]  ;;  %v765_v42 = vld [vmem:[#allocation2 + $0x30] sm:$0xff] }
 0x396   : > { %v1024_v43 = vpack.c.bf16 %v766_v11, %v764_v6  ;;  %v1026_v44 = vpack.c.bf16 %v765_v42, %v763_v8 }
 0x398   : > { %1025 = vmatprep.subr.bf16.mxu1 %v1024_v43 }
 0x399   : > { %1027 = vmatpush1.bf16.msra.mxu1 %v1026_v44  ;;  %v768_v45 = vld [vmem:[#allocation2 + $0x48] sm:$0xf]  ;;  %v767_v5 = vld [vmem:[#allocation2 + $0x40] sm:$0xf] }
 0x39a   : > { %1002 = vmatprep.subr.msk.mxu1 %vm531_vm8, %v768_v45 }
 0x39d   : > { %1003 = vmatpush1.msk.msra.mxu1 %vm531_vm8, %v767_v5 }
 0x39e   : > { %1004 = vmatmul.mubr.msk.f32.vlgmr.msra.gmra.mrb[0].mxu1 %vm527_vm9, %v652_v46 }
 0x471   : > { %v844_v34 = vpop.f32.mrb[0].mxu1 }
 0x472   : > { %v856_v35 = vmul.f32 %v844_v34, %v844_v34  ;;  %v846_v48 = vpop.f32.mrb[1].mxu1  ;;  %v851_v49 = vsel %vm531_vm8, %v844_v34, 0.0 }
 0x473   : > { %v852_v51 = vsel %vm531_vm8, %v846_v48, 0.0  ;;  %v857_v52 = vmul.f32 %v846_v48, %v846_v48 }
 0x474   : > { %v853_v53 = vadd.f32 %v852_v51, %v851_v49  ;;  %v858_v24 = vsel %vm531_vm8, %v856_v35, 0.0 }
 0x475   : > { %v859_v54 = vsel %vm531_vm8, %v857_v52, 0.0 }
 0x476   : > { %854 = vadd.xlane.f32.xlu0 %v853_v53  ;;  %v860_v25 = vadd.f32 %v859_v54, %v858_v24 }
 0x478   : > { %861 = vadd.xlane.f32.xlu1 %v860_v25 }
 0x489   : > { %881 = vperm.xlu1 %1099, %v850_v55  }
 0x503   : > { %v855_v56 = vpop.xlane.xlu0 %854 }
 0x504   : > { %v863_v57 = vmul.f32 0.00390625, %v855_v56 }
 0x505   : > { %v862_v58 = vpop.xlane.xlu1 %861 }
 0x506   : > { %v864_v61 = vmul.f32 0.00390625, %v862_v58  ;;  %v865_v12 = vmul.f32 %v863_v57, %v863_v57  ;;  %v870_v13 = vsub.f32 %v844_v34, %v863_v57  ;;  %v871_v62 = vsub.f32 %v846_v48, %v863_v57 }
 0x508   : > { %v866_v63 = vsub.f32 %v864_v61, %v865_v12 }
 0x509   : > { %v882_v14 = vpop.permute.xlu1 %881 }
 0x50a   : > { %v867_v1 = vadd.f32 1e-05, %v866_v63 }
 0x50c   : > { %1103 = vrsqrt.f32 %v867_v1 }
 0x516   : > { %v1104_v3 = vpop.eup %1103 }
 0x517   : > { %v869_v9 = vmul.f32 %v1104_v3, %v849_v2 }
 0x519   : > { %874 = vperm.xlu0 %1098, %v869_v9  }
 0x598   : > { %v875_v20 = vpop.permute.xlu0 %874 }
 0x599   : > { %v877_v21 = vmul.f32 %v875_v20, %v870_v13  ;;  %v878_v10 = vmul.f32 %v875_v20, %v871_v62 }
 0x59b   : > { %v884_v15 = vadd.f32 %v882_v14, %v877_v21  ;;  %v885_v16 = vadd.f32 %v882_v14, %v878_v10 }
 0x59d   : > { %v888_v17 = vcombine.low %v884_v15, %v885_v16 }
 0x59f   : > { %v890_v31 = vadd.f32 %v888_v17, %v1416_v0 }
 0x5a1   : > { %891 = vst [vmem:[%s324_s23] sm:$0xff] %v890_v31 }
 0x5a2   : > { %1174 = shalt.err (!%p1171_p11)
}
 0x5a3   : > { %s1175_s13 = scalar_lea.hbm %s1667_s21, 128  ;;  %s1179_s20 = scalar_lea.hbm %s1717_s8, 256 }
 0x5a4   : > { %p1176_p13 = scmp.ne.s32.totalorder %s1667_s21, %s1175_s13  ;;  %p1180_p5 = scmp.lt.u32.totalorder %s1667_s21, %s1717_s8 }
 0x5a5   : > { %p1181_p9 = scmp.lt.u32.totalorder %s1179_s20, %s1175_s13  ;;  %p1183_p12 = scmp.lt.u32.totalorder %s1175_s13, %s1667_s21 }
 0x5a6   : > { %p1177_p6 = pnand %p1176_p13, %p1730_p1 }
 0x5a7   : > { %p1182_p10 = por %p1181_p9, %p1180_p5 }
 0x5a8   : > { %p1178_p0 = pneg %p1177_p6 }
 0x5a9   : > { %p1184_p2 = por %p1183_p12, %p1182_p10 }
 0x5ab   : > { %p1185_p3 = pnand %p1184_p2, %p1178_p0 }
 0x5ad   : > { %1188 = shalt.err (!%p1185_p3)
}
 0x5ae   : > { %1036 = dma.vmem_to_hbm [thread:$0]  (%p1730_p1), %s1669_s17, 128, %s1667_s21, %s893_s24  }
 0x5af PF: > { %p1053_p4 = scmp.ge.s32.totalorder %s1231_s30, 2  ;;  %s919_s22 = sand.u32 1, %s1219_s27  }
 0x5b0   : > { %p1731_p7 = scmp.ne.s32.totalorder %s1722_s16, 0  ;;  %s920_s26 = scalar_lea.sflag [#allocation5], %s919_s22 }
 0x5b2   : > { %p1046_p8 = pnand %p1053_p4, %p1731_p7 }
 0x5b4   : > { %1214 = dma.done.wait (!%p1046_p8), %s920_s26, 128  }
 0x5b5   : > { %1216 = vsyncadd (!%p1046_p8), %s920_s26, 4294967168  ;;  %p20_p11 = scmp.ge.s32.totalorder %s1316_s11, 4   ;;  %s1732_s27 = smov %s1223_s28 }
 0x5b6   : > { %s1733_s28 = smov %s1227_s29  ;;  %s1734_s29 = smov %s1327_s14 }
 0x5b7   : > { %s1735_s30 = smov %s1316_s11  ;;  %22 = sbr.rel (!%p20_p11) target bundleno = 5 (0x5), region = 96 }
 0x5be   :  { %925 = vsyncpa [#allocation4], 1 }
 0x5bf   :  { %927 = vsyncpa [#allocation4 + $0x1], 1 }
 0x5c0   :  { %928 = vsyncpa [#allocation7], 1 }
 0x5c1   :  { %929 = vsyncpa [#allocation5], 1 }
 0x5c2   :  { %931 = vsyncpa [#allocation5 + $0x1], 1 }

</bundles_post_ra>
